<compile_context>
chip_gen: v7x
topology: tpu7x:2x2x1
jax: 0.10.0
libtpu: 0.0.40
codegen_flags: <defaults>
</compile_context>

<pallas_src>
import functools

import jax
import jax.numpy as jnp
from jax.experimental import pallas as pl
from jax.experimental.pallas import tpu as pltpu

# Fixed "parameters" of the module: 3x3 LoG-style filter replicated across the
# 3 input channels, single output channel (ModelLoss.generate_filter()).
FILTER_3X3 = (
    (-1.0 / 8.0, -1.0 / 8.0, -1.0 / 8.0),
    (-1.0 / 8.0,  8.0 / 8.0, -1.0 / 8.0),
    (-1.0 / 8.0, -1.0 / 8.0, -1.0 / 8.0),
)

VALUE_WEIGHT = 0.9
EDGE_WEIGHT = 0.1


def _banded(n):
    # Tri-diagonal 0/1 matrix: B[i, j] = 1 iff |i - j| <= 1.  Multiplying by it
    # implements a 3-wide running sum with zero boundary (== conv padding=1).
    i = jax.lax.broadcasted_iota(jnp.int32, (n, n), 0)
    j = jax.lax.broadcasted_iota(jnp.int32, (n, n), 1)
    return jnp.where(jnp.abs(i - j) <= 1, 1.0, 0.0).astype(jnp.float32)


def _model_loss_kernel(x_ref, t_ref, out_ref, *, value_scale, edge_scale):
    # x_ref / t_ref: (1, C, H, W) block = one batch element, in the input dtype.
    n = pl.program_id(0)

    @pl.when(n == 0)
    def _init():
        out_ref[0] = 0.0

    x = x_ref[0].astype(jnp.float32)          # (C, H, W); upcast after DMA
    t = t_ref[0].astype(jnp.float32)
    d = x - t                                 # conv is linear: conv(x)-conv(t) == conv(d)

    # ---- value L1 partial: full-block reduce, no slicing ----
    value_part = jnp.sum(jnp.abs(d))

    # ---- edge L1 partial ----
    ds = jnp.sum(d, axis=0)                   # filter identical per channel -> sum C first
    H, W = ds.shape
    # zero-padded 3x3 box sum via two banded matmuls on the MXU
    box = jnp.dot(_banded(H), ds, preferred_element_type=jnp.float32)
    box = jnp.dot(box, _banded(W), preferred_element_type=jnp.float32)
    edge = (9.0 * ds - box) * 0.125           # == conv2d(d, LoG filter, padding=1)
    edge_part = jnp.sum(jnp.abs(edge))

    # Per-batch contribution already normalized & weighted; accumulate in the
    # resident SMEM output (same output block index every step -> accumulator).
    out_ref[0] += value_part * value_scale + edge_part * edge_scale


def model_loss(inp, target, value_weight=VALUE_WEIGHT, edge_weight=EDGE_WEIGHT):
    """Pallas implementation of ModelLoss.forward (reduction='elementwise_mean')."""
    assert inp.shape == target.shape and inp.ndim == 4
    N, C, H, W = inp.shape
    assert C == 3, "the module's fixed edge filter expects 3 input channels"

    kernel = functools.partial(
        _model_loss_kernel,
        value_scale=float(value_weight) / float(N * C * H * W),
        edge_scale=float(edge_weight) / float(N * H * W))

    itemsize = jnp.dtype(inp.dtype).itemsize
    cost = pl.CostEstimate(
        flops=N * (3 * C * H * W + 2 * H * H * W + 2 * H * W * W + 5 * H * W),
        transcendentals=0,
        bytes_accessed=2 * N * C * H * W * itemsize + 4)

    out = pl.pallas_call(
        kernel,
        grid=(N,),
        in_specs=[
            pl.BlockSpec((1, C, H, W), lambda n: (n, 0, 0, 0)),
            pl.BlockSpec((1, C, H, W), lambda n: (n, 0, 0, 0)),
        ],
        out_specs=pl.BlockSpec((1,), lambda n: (0,),
                               memory_space=pltpu.MemorySpace.SMEM),
        out_shape=jax.ShapeDtypeStruct((1,), jnp.float32),
        compiler_params=pltpu.CompilerParams(
            dimension_semantics=("arbitrary",)),   # batch axis is a reduction here
        cost_estimate=cost,
    )(inp, target)
    return out[0]


def _reference_loss(inp, target, value_weight=VALUE_WEIGHT, edge_weight=EDGE_WEIGHT):
    # Exact-f32 pure-JAX mirror of F.l1_loss + F.conv2d(log_filter, padding=1).
    f = jnp.array(FILTER_3X3, jnp.float32)
    N, C, H, W = inp.shape

    def conv(a):
        ap = jnp.pad(a.astype(jnp.float32), ((0, 0), (0, 0), (1, 1), (1, 1)))
        out = jnp.zeros((N, H, W), jnp.float32)
        for c in range(C):
            for i in range(3):
                for j in range(3):
                    out = out + f[i, j] * ap[:, c, i:i + H, j:j + W]
        return out

    v = jnp.mean(jnp.abs(inp.astype(jnp.float32) - target.astype(jnp.float32)))
    e = jnp.mean(jnp.abs(conv(inp) - conv(target)))
    return v * value_weight + e * edge_weight


if __name__ == "__main__":
    key = jax.random.PRNGKey(0)
    k1, k2 = jax.random.split(key)
    # NCHW with 3 channels, as the module's fixed RGB edge filter requires.
    x = jax.random.normal(k1, (2, 3, 16, 16), dtype=jnp.float32)
    t = jax.random.normal(k2, (2, 3, 16, 16), dtype=jnp.float32)

    loss = jax.block_until_ready(model_loss(x, t))
    ref = jax.block_until_ready(_reference_loss(x, t))

    assert jnp.allclose(loss, ref, rtol=2e-3, atol=2e-3), (loss, ref)
    print("KERNEL_OK")
</pallas_src>

<mosaic_0001>
module attributes {stable_mosaic.version = 11 : i64} {
  func.func @_model_loss_kernel(%arg0: i32, %arg1: memref<1x3x16x16xf32, #tpu.memory_space<vmem>>, %arg2: memref<1x3x16x16xf32, #tpu.memory_space<vmem>>, %arg3: memref<1xf32, #tpu.memory_space<smem>>) attributes {dimension_semantics = [#tpu.dimension_semantics<arbitrary>], iteration_bounds = array<i64: 2>, scalar_prefetch = 0 : i64, scratch_operands = 0 : i64, tpu.core_type = #tpu.core_type<tc>, window_params = [{transform_indices = @transform_0, window_bounds = array<i64: 1, 3, 16, 16>}, {transform_indices = @transform_1, window_bounds = array<i64: 1, 3, 16, 16>}, {transform_indices = @transform_2, window_bounds = array<i64: 1>}]} {
    %c0_i32 = arith.constant 0 : i32
    %0 = arith.cmpi eq, %arg0, %c0_i32 : i32
    %1 = arith.extui %0 : i1 to i32
    %c0_i32_0 = arith.constant 0 : i32
    %2 = arith.cmpi ne, %1, %c0_i32_0 : i32
    scf.if %2 {
      %cst_23 = arith.constant 0.000000e+00 : f32
      %c0_24 = arith.constant 0 : index
      %50 = memref.load %arg3[%c0_24] : memref<1xf32, #tpu.memory_space<smem>>
      memref.store %cst_23, %arg3[%c0_24] : memref<1xf32, #tpu.memory_space<smem>>
    } else {
    }
    %c0 = arith.constant 0 : index
    %c0_1 = arith.constant 0 : index
    %c0_2 = arith.constant 0 : index
    %c0_3 = arith.constant 0 : index
    %3 = vector.load %arg1[%c0, %c0_1, %c0_2, %c0_3] : memref<1x3x16x16xf32, #tpu.memory_space<vmem>>, vector<1x3x16x16xf32>
    %4 = vector.shape_cast %3 : vector<1x3x16x16xf32> to vector<3x16x16xf32>
    %c0_4 = arith.constant 0 : index
    %c0_5 = arith.constant 0 : index
    %c0_6 = arith.constant 0 : index
    %c0_7 = arith.constant 0 : index
    %5 = vector.load %arg2[%c0_4, %c0_5, %c0_6, %c0_7] : memref<1x3x16x16xf32, #tpu.memory_space<vmem>>, vector<1x3x16x16xf32>
    %6 = vector.shape_cast %5 : vector<1x3x16x16xf32> to vector<3x16x16xf32>
    %7 = arith.subf %4, %6 : vector<3x16x16xf32>
    %8 = math.absf %7 : vector<3x16x16xf32>
    %9 = vector.shape_cast %8 : vector<3x16x16xf32> to vector<1x3x16x16xf32>
    %cst = arith.constant dense<0.000000e+00> : vector<1xf32>
    %10 = vector.multi_reduction <add>, %9, %cst [1, 2, 3] : vector<1x3x16x16xf32> to vector<1xf32>
    %11 = vector.shape_cast %10 : vector<1xf32> to vector<1x1x1x1xf32>
    %12 = vector.extract %11[0, 0, 0, 0] : f32 from vector<1x1x1x1xf32>
    %cst_8 = arith.constant dense<0.000000e+00> : vector<16x16xf32>
    %13 = vector.multi_reduction <add>, %7, %cst_8 [0] : vector<3x16x16xf32> to vector<16x16xf32>
    %14 = tpu.iota {dimensions = array<i32: 0>} : vector<16x16xi32>
    %15 = tpu.iota {dimensions = array<i32: 1>} : vector<16x16xi32>
    %16 = arith.subi %14, %15 : vector<16x16xi32>
    %17 = math.absi %16 : vector<16x16xi32>
    %c1_i32 = arith.constant 1 : i32
    %18 = vector.broadcast %c1_i32 : i32 to vector<16x16xi32>
    %19 = arith.cmpi sle, %17, %18 : vector<16x16xi32>
    %cst_9 = arith.constant 1.000000e+00 : f32
    %cst_10 = arith.constant 0.000000e+00 : f32
    %20 = vector.broadcast %cst_9 : f32 to vector<16x16xf32>
    %21 = vector.broadcast %cst_10 : f32 to vector<16x16xf32>
    %22 = arith.select %19, %20, %21 : vector<16x16xi1>, vector<16x16xf32>
    %cst_11 = arith.constant dense<0.000000e+00> : vector<16x16xf32>
    %23 = tpu.matmul %22, %13, %cst_11 {dimension_numbers = #tpu.dot_dimension_numbers<[1], [0], [0], [1], [0, 0, 1, 1], [], []>} : vector<16x16xf32>, vector<16x16xf32>, vector<16x16xf32> -> vector<16x16xf32>
    %24 = tpu.iota {dimensions = array<i32: 0>} : vector<16x16xi32>
    %25 = tpu.iota {dimensions = array<i32: 1>} : vector<16x16xi32>
    %26 = arith.subi %24, %25 : vector<16x16xi32>
    %27 = math.absi %26 : vector<16x16xi32>
    %c1_i32_12 = arith.constant 1 : i32
    %28 = vector.broadcast %c1_i32_12 : i32 to vector<16x16xi32>
    %29 = arith.cmpi sle, %27, %28 : vector<16x16xi32>
    %cst_13 = arith.constant 1.000000e+00 : f32
    %cst_14 = arith.constant 0.000000e+00 : f32
    %30 = vector.broadcast %cst_13 : f32 to vector<16x16xf32>
    %31 = vector.broadcast %cst_14 : f32 to vector<16x16xf32>
    %32 = arith.select %29, %30, %31 : vector<16x16xi1>, vector<16x16xf32>
    %cst_15 = arith.constant dense<0.000000e+00> : vector<16x16xf32>
    %33 = tpu.matmul %23, %32, %cst_15 {dimension_numbers = #tpu.dot_dimension_numbers<[1], [0], [0], [1], [0, 0, 1, 1], [], []>} : vector<16x16xf32>, vector<16x16xf32>, vector<16x16xf32> -> vector<16x16xf32>
    %cst_16 = arith.constant 9.000000e+00 : f32
    %34 = vector.broadcast %cst_16 : f32 to vector<16x16xf32>
    %35 = arith.mulf %34, %13 : vector<16x16xf32>
    %36 = arith.subf %35, %33 : vector<16x16xf32>
    %cst_17 = arith.constant 1.250000e-01 : f32
    %37 = vector.broadcast %cst_17 : f32 to vector<16x16xf32>
    %38 = arith.mulf %36, %37 : vector<16x16xf32>
    %39 = math.absf %38 : vector<16x16xf32>
    %40 = vector.shape_cast %39 : vector<16x16xf32> to vector<1x16x16xf32>
    %cst_18 = arith.constant dense<0.000000e+00> : vector<1xf32>
    %41 = vector.multi_reduction <add>, %40, %cst_18 [1, 2] : vector<1x16x16xf32> to vector<1xf32>
    %42 = vector.shape_cast %41 : vector<1xf32> to vector<1x1x1xf32>
    %43 = vector.extract %42[0, 0, 0] : f32 from vector<1x1x1xf32>
    %c0_19 = arith.constant 0 : index
    %44 = memref.load %arg3[%c0_19] : memref<1xf32, #tpu.memory_space<smem>>
    %cst_20 = arith.constant 5.85937523E-4 : f32
    %45 = arith.mulf %12, %cst_20 : f32
    %cst_21 = arith.constant 1.95312503E-4 : f32
    %46 = arith.mulf %43, %cst_21 : f32
    %47 = arith.addf %45, %46 : f32
    %48 = arith.addf %44, %47 : f32
    %c0_22 = arith.constant 0 : index
    %49 = memref.load %arg3[%c0_22] : memref<1xf32, #tpu.memory_space<smem>>
    memref.store %48, %arg3[%c0_22] : memref<1xf32, #tpu.memory_space<smem>>
    return
  }
  func.func @transform_0(%arg0: i32) -> (i32, i32, i32, i32) {
    %c0_i32 = arith.constant 0 : i32
    %c0_i32_0 = arith.constant 0 : i32
    %c0_i32_1 = arith.constant 0 : i32
    %c0_i32_2 = arith.constant 0 : i32
    return %arg0, %c0_i32, %c0_i32_0, %c0_i32_1 : i32, i32, i32, i32
  }
  func.func @transform_1(%arg0: i32) -> (i32, i32, i32, i32) {
    %c0_i32 = arith.constant 0 : i32
    %c0_i32_0 = arith.constant 0 : i32
    %c0_i32_1 = arith.constant 0 : i32
    %c0_i32_2 = arith.constant 0 : i32
    return %arg0, %c0_i32, %c0_i32_0, %c0_i32_1 : i32, i32, i32, i32
  }
  func.func @transform_2(%arg0: i32) -> i32 {
    %c0_i32 = arith.constant 0 : i32
    %c0_i32_0 = arith.constant 0 : i32
    return %c0_i32 : i32
  }
}

</mosaic_0001>

<bundles_post_ra>
// kernel: tpu_custom_call.1
= control target key start
LH: loop header
LB: loop body
LE: loop exit
PB: predicated region body
PF: predicated region fallthrough
CT: control target
= control target key end

     0   :  { %7 = vsyncpa [#allocation3], 0  ;;  %s994_s0 = inlined_call_operand.hbm [shape: f32[2,3,16,16], index: 0, kind: input, shape index: {}]   ;;  %s995_s1 = inlined_call_operand.hbm [shape: f32[2,3,16,16], index: 1, kind: input, shape index: {}]   ;;  %s996_s2 = inlined_call_operand.hbm [shape: f32[1], index: 2, kind: output, shape index: {}]  }
   0x1   :  { %9 = vsyncpa [#allocation3 + $0x1], 0 }
   0x2   :  { %10 = vsyncpa [#allocation6], 0 }
   0x3   :  { %12 = vsyncpa [#allocation6 + $0x1], 0 }
   0x4   :  { %13 = vsyncpa [#allocation4], 0  ;;  %s792_s9 = smov 0   ;;  %s794_s10 = smov 0  }
   0x5   :  { %s796_s11 = smov 0   ;;  %s798_s12 = smov 0  }
   0x6 LB: > { %s536_s13 = sadd.s32 4294967295, %s767_s12   ;;  %s812_s14 = sadd.s32 1, %s767_s12   ;;  %s767_s12 = sphi %s798_s12, %s1009_s12   ;;  %s763_s11 = sphi %s796_s11, %s1008_s11   ;;  %s759_s10 = sphi %s794_s10, %s1007_s10   ;;  %s755_s9 = sphi %s792_s9, %s1006_s9  }
   0x7   : > { %s23_s15 = ssub.s32 %s767_s12, %s812_s14  ;;  %s26_s16 = sadd.s32 1, %s763_s11 }
   0x8   : > { %p24_p0 = scmp.eq.s32.totalorder %s23_s15, 0  ;;  %p33_p1 = scmp.ne.s32.totalorder %s763_s11, %s759_s10 }
   0x9   : > { %p34_p2 = scmp.eq.s32.totalorder %s767_s12, 0  ;;  %p39_p3 = scmp.ne.s32.totalorder %s759_s10, %s755_s9 }
   0xa   : > { %s822_s17 = scalar_select %p24_p0, %s763_s11, %s26_s16  }
   0xb   : > { %p35_p4 = por %p34_p2, %p33_p1  ;;  %p826_p5 = scmp.eq.s32.totalorder %s536_s13, 0 }
   0xc   : > { %p611_p6 = scmp.lt.s32.totalorder %s767_s12, 2  ;;  %s838_s20 = sand.u32 1, %s763_s11  }
   0xd   : > { %s999_s18 = scalar_select %p826_p5, 1, 0 }
   0xe   : > { %p833_p7 = por %p826_p5, %p39_p3  ;;  %s585_s21 = smul.u32 48, %s838_s20 }
   0xf   : > { %s586_s22 = smul.u32 768, %s767_s12  ;;  %p842_p8 = pnand %p611_p6, %p35_p4 }
  0x10   : > { %s1000_s19 = scalar_select %p833_p7, 1, 0 }
  0x11   : > { %s851_s26 = scalar_lea.hbm %s994_s0, %s586_s22  ;;  %s114_s27 = scalar_lea.vmem [#allocation2], %s585_s21 }
  0x12   : > { %s121_s28 = sshll.u32 %s114_s27, 4  ;;  %s111_s29 = scalar_lea.sflag [#allocation3], %s838_s20  ;;  %s855_s28 = int_to_ptr.vmem [resolvable:$true] %s121_s28 }
  0x13   : > { %s653_s30 = scalar_lea.hbm %s851_s26, 768  ;;  %p655_p11 = pneg %p842_p8 }
  0x14   : > { %p654_p10 = scmp.ne.s32.totalorder %s851_s26, %s653_s30  ;;  %s658_s5 = scalar_lea.hbm %s994_s0, 1536 }
  0x15   : > { %p659_p0 = scmp.lt.u32.totalorder %s851_s26, %s994_s0  ;;  %p660_p1 = scmp.lt.u32.totalorder %s658_s5, %s653_s30 }
  0x16   : > { %p656_p12 = pnand %p655_p11, %p654_p10  ;;  %p662_p3 = scmp.lt.u32.totalorder %s653_s30, %s851_s26 }
  0x17   : > { %p661_p2 = por %p660_p1, %p659_p0 }
  0x18   : > { %p657_p13 = pneg %p656_p12 }
  0x19   : > { %p663_p4 = por %p662_p3, %p661_p2 }
  0x1b   : > { %p664_p6 = pnand %p663_p4, %p657_p13 }
  0x1d   : > { %667 = shalt.err (!%p664_p6)
}
  0x1e   : > { %s668_s8 = scalar_lea.vmem %s855_s28, 768  ;;  %s769_s9 = smov [#allocation2]  }
  0x1f   : > { %p669_p10 = scmp.ne.s32.totalorder %s855_s28, %s668_s8  ;;  %s673_s15 = sshll.u32 %s769_s9, 4  ;;  %s674_s15 = int_to_ptr.vmem [resolvable:$false] %s673_s15 }
  0x20   : > { %s675_s16 = scalar_lea.vmem %s674_s15, 1536  ;;  %p676_p5 = scmp.lt.s32.totalorder %s855_s28, %s674_s15 }
  0x21   : > { %p671_p12 = pnand %p669_p10, %p655_p11  ;;  %p677_p0 = scmp.lt.s32.totalorder %s675_s16, %s668_s8 }
  0x23   : > { %p672_p9 = pneg %p671_p12  ;;  %p678_p1 = por %p677_p0, %p676_p5 }
  0x25   : > { %p679_p2 = pnand %p678_p1, %p672_p9 }
  0x27   : > { %682 = shalt.err (!%p679_p2)
}
  0x28   : > { %s770_s24 = smov 128   ;;  %s771_s25 = smov 8  }
  0x29   : > { %607 = dma.hbm_to_vmem [thread:$0]  (!%p842_p8), %s851_s26, 768, %s855_s28, %s111_s29, %s770_s24, %s770_s24, %s771_s25  }
  0x2a   : > { %p150_p5 = scmp.lt.s32.totalorder %s767_s12, 3  ;;  %s895_s3 = scalar_lea.hbm %s995_s1, %s586_s22 }
  0x2b   : > { %p1002_p9 = scmp.ge.s32.totalorder %s767_s12, 1  ;;  %s135_s5 = scalar_lea.vmem [#allocation5], %s585_s21 }
  0x2c   : > { %s142_s6 = sshll.u32 %s135_s5, 4  ;;  %s132_s26 = scalar_lea.sflag [#allocation6], %s838_s20  ;;  %s905_s6 = int_to_ptr.vmem [resolvable:$true] %s142_s6 }
  0x2d   : > { %p899_p13 = pnand %p1002_p9, %p150_p5  ;;  %s683_s28 = scalar_lea.hbm %s895_s3, 768 }
  0x2e   : > { %p684_p3 = scmp.ne.s32.totalorder %s895_s3, %s683_s28  ;;  %s688_s7 = scalar_lea.hbm %s995_s1, 1536 }
  0x2f   : > { %p689_p10 = scmp.lt.u32.totalorder %s895_s3, %s995_s1  ;;  %p690_p12 = scmp.lt.u32.totalorder %s688_s7, %s683_s28 }
  0x30   : > { %p686_p4 = pnand %p684_p3, %p655_p11  ;;  %p692_p1 = scmp.lt.u32.totalorder %s683_s28, %s895_s3 }
  0x31   : > { %p691_p0 = por %p690_p12, %p689_p10 }
  0x32   : > { %p687_p6 = pneg %p686_p4 }
  0x33   : > { %p693_p2 = por %p692_p1, %p691_p0 }
  0x35   : > { %p694_p5 = pnand %p693_p2, %p687_p6 }
  0x37   : > { %697 = shalt.err (!%p694_p5)
}
  0x38   : > { %s698_s21 = scalar_lea.vmem %s905_s6, 768  ;;  %s772_s15 = smov [#allocation5]  }
  0x39   : > { %p699_p9 = scmp.ne.s32.totalorder %s905_s6, %s698_s21  ;;  %s703_s16 = sshll.u32 %s772_s15, 4  ;;  %s704_s16 = int_to_ptr.vmem [resolvable:$false] %s703_s16 }
  0x3a   : > { %s705_s27 = scalar_lea.vmem %s704_s16, 1536  ;;  %p706_p7 = scmp.lt.s32.totalorder %s905_s6, %s704_s16 }
  0x3b   : > { %p701_p3 = pnand %p699_p9, %p655_p11  ;;  %p707_p10 = scmp.lt.s32.totalorder %s705_s27, %s698_s21 }
  0x3d   : > { %p702_p4 = pneg %p701_p3  ;;  %p708_p12 = por %p707_p10, %p706_p7 }
  0x3f   : > { %p709_p0 = pnand %p708_p12, %p702_p4 }
  0x41   : > { %712 = shalt.err (!%p709_p0)
}
  0x42   : > { %610 = dma.hbm_to_vmem [thread:$0]  (!%p842_p8), %s895_s3, 768, %s905_s6, %s132_s26, %s770_s24, %s770_s24, %s771_s25  }
  0x43   : > { %154 = sbr.rel (%p899_p13) target bundleno = 748 (0x2ec), region = 28  ;;  %s156_s30 = sand.u32 (!%p899_p13), 1, %s759_s10  }
  0x44   : > { %s589_s5 = smul.u32 (!%p899_p13), 48, %s156_s30  ;;  %s157_s28 = scalar_lea.sflag (!%p899_p13), [#allocation3], %s156_s30 }
  0x45   : > { %p1004_p7 = scmp.ne.s32.totalorder (!%p899_p13), %s1000_s19, 0 }
  0x46   : > { %s160_s22 = scalar_lea.vmem (!%p899_p13), [#allocation2], %s589_s5 }
  0x4a   : > { %742 = dma.done.wait (%p1004_p7), %s157_s28, 768  }
  0x4b   : > { %744 = vsyncadd (%p1004_p7), %s157_s28, 4294966528  ;;  %s166_s23 = scalar_lea.sflag [#allocation6], %s156_s30  ;;  %s169_s20 = scalar_lea.vmem [#allocation5], %s589_s5 }
  0x4c   : > { %746 = dma.done.wait (%p1004_p7), %s166_s23, 768  }
  0x4d   : > { %748 = vsyncadd (%p1004_p7), %s166_s23, 4294966528  ;;  %v251_v0 = vlaneseq  ;;  %v196_v7 = vld [vmem:[%s160_s22] sm:$0xff]  ;;  %v197_v8 = vld [vmem:[%s160_s22 + $0x8] sm:$0xff]  ;;  %vm220_vm0 = vcmask 130048   ;;  %v773_v36 = vmov 0.0   ;;  %s775_s19 = smov 0.0  }
  0x4e   : > { %v198_v9 = vld [vmem:[%s160_s22 + $0x10] sm:$0xff]  ;;  %v199_v10 = vld [vmem:[%s160_s22 + $0x18] sm:$0xff]  ;;  %v200_v11 = vld [vmem:[%s160_s22 + $0x20] sm:$0xff]  ;;  %v774_v40 = vmov 1.0|1.0   ;;  %p1005_p8 = scmp.ne.s32.totalorder %s999_s18, 0 }
  0x4f   : > { %v252_v1 = vshrl.u32 %v251_v0, 7  ;;  %v255_v2 = vand.u32 127, %v251_v0  ;;  %v201_v12 = vld [vmem:[%s160_s22 + $0x28] sm:$0xff]  ;;  %v202_v15 = vld [vmem:[%s169_s20] sm:$0xff]  ;;  %v204_v17 = vld [vmem:[%s169_s20 + $0x10] sm:$0xff]  ;;  %p613_p11 = scmp.eq.s32.totalorder %s536_s13, 1 }
  0x50   : > { %v203_v16 = vld [vmem:[%s169_s20 + $0x8] sm:$0xff]  ;;  %v205_v18 = vld [vmem:[%s169_s20 + $0x18] sm:$0xff]  ;;  %v206_v19 = vld [vmem:[%s169_s20 + $0x20] sm:$0xff]  ;;  %v208_v21 = vsub.f32 %v196_v7, %v202_v15  ;;  %v210_v23 = vsub.f32 %v198_v9, %v204_v17  ;;  %599 = sst [smem:[#allocation7]] (%p1005_p8), %s775_s19  ;;  %s713_s8 = scalar_lea.hbm %s996_s2, 16 }
  0x51   : > { %v253_v3 = vadd.s32 8, %v252_v1  ;;  %v256_v4 = vsub.s32 %v252_v1, %v255_v2  ;;  %v207_v20 = vld [vmem:[%s169_s20 + $0x28] sm:$0xff]  ;;  %v209_v22 = vsub.f32 %v197_v8, %v203_v16  ;;  %v211_v25 = vsub.f32 %v199_v10, %v205_v18  ;;  %s450_s25 = sld [smem:[#allocation7]]  ;;  %p714_p13 = scmp.ne.s32.totalorder %s996_s2, %s713_s8 }
  0x52   : > { %v212_v26 = vsub.f32 %v200_v11, %v206_v19  ;;  %v213_v27 = vsub.f32 %v201_v12, %v207_v20  ;;  %v241_v28 = vsel %vm220_vm0, %v208_v21, 0.0  ;;  %v242_v29 = vsel %vm220_vm0, %v210_v23, 0.0  ;;  %p719_p2 = scmp.lt.u32.totalorder %s713_s8, %s996_s2 }
  0x53   : > { %v257_v5 = vsub.s32 %v253_v3, %v255_v2  ;;  %v259_v6 = vsub.s32 0, %v256_v4  ;;  %v243_v30 = vadd.f32 %v242_v29, %v241_v28  ;;  %v246_v32 = vsel %vm220_vm0, %v209_v22, 0.0  ;;  %p715_p6 = pnand %p714_p13, %p613_p11 }
  0x54   : > { %v244_v31 = vsel %vm220_vm0, %v212_v26, 0.0  ;;  %v247_v33 = vsel %vm220_vm0, %v211_v25, 0.0  ;;  %v249_v35 = vsel %vm220_vm0, %v213_v27, 0.0  ;;  %v214_v45 = vand.u32 2147483647, %v208_v21 }
  0x55   : > { %v543_v13 = vmin.u32 %v259_v6, %v256_v4  ;;  %v262_v14 = vsub.s32 0, %v257_v5  ;;  %v248_v34 = vadd.f32 %v247_v33, %v246_v32  ;;  %v245_v38 = vadd.f32 %v244_v31, %v243_v30  ;;  %p716_p1 = pneg %p715_p6 }
  0x56   : > { %v215_v46 = vand.u32 2147483647, %v209_v22  ;;  %v216_v47 = vand.u32 2147483647, %v210_v23  ;;  %v221_v48 = vsel %vm220_vm0, %v214_v45, 0.0 }
  0x57   : > { %v544_v24 = vmin.u32 %v262_v14, %v257_v5  ;;  %vm264_vm1 = vcmp.le.s32.totalorder %v543_v13, 1  ;;  %v250_v39 = vadd.f32 %v249_v35, %v248_v34  ;;  %v217_v51 = vand.u32 2147483647, %v211_v25  ;;  %p721_p5 = pnand %p719_p2, %p716_p1 }
  0x58   : > { %v266_v37 = vsel %vm264_vm1, 1.0, %v773_v36  ;;  %v222_v49 = vsel %vm220_vm0, %v215_v46, 0.0  ;;  %v224_v52 = vsel %vm220_vm0, %v216_v47, 0.0  ;;  %v218_v54 = vand.u32 2147483647, %v212_v26 }
  0x59   : > { %vm265_vm2 = vcmp.le.s32.totalorder %v544_v24, 1  ;;  %567 = vmatprep.mubr.msk.f32.mxu0 %vm220_vm0, %v266_v37  ;;  %v577_v41 = vpack.c.bf16 %v250_v39, %v245_v38  ;;  %v223_v50 = vadd.f32 %v222_v49, %v221_v48  ;;  %v226_v55 = vsel %vm220_vm0, %v217_v51, 0.0 }
  0x5a   : > { %vm581_vm3 = vmpackc.low %vm265_vm2, %vm264_vm1  ;;  %v267_v42 = vsel %vm265_vm2, 1.0, %v773_v36  ;;  %v219_v57 = vand.u32 2147483647, %v213_v27  ;;  %v228_v58 = vsel %vm220_vm0, %v218_v54, 0.0  ;;  %v431_v62 = vmul.f32 9.0, %v250_v39 }
  0x5b   : > { %582 = vmatprep.subr.msk.bf16.mxu1 %vm581_vm3, %v774_v40  ;;  %578 = vmatprep.subr.bf16.mxu0 %v577_v41  ;;  %v225_v53 = vadd.f32 %v224_v52, %v223_v50  ;;  %v430_v63 = vmul.f32 9.0, %v245_v38 }
  0x5c   : > { %584 = vmatpush3.bf16.msk.msra.mxu1 %vm581_vm3, %v774_v40  ;;  %580 = vmatpush3.bf16.msra.mxu0 %v577_v41  ;;  %v230_v60 = vsel %vm220_vm0, %v219_v57, 0.0 }
  0x5d   : > { %v227_v56 = vadd.f32 %v226_v55, %v225_v53 }
  0x5f   : > { %568 = vmatmul.mubr.msk.f32.vlgmr.msra.gmra.mrb[0].mxu0 %vm220_vm0, %v267_v42  ;;  %v229_v59 = vadd.f32 %v228_v58, %v227_v56 }
  0x61   : > { %v231_v61 = vadd.f32 %v230_v60, %v229_v59 }
  0x63   : > { %232 = vadd.xlane.f32.xlu0 %v231_v61 }
  0xf0   : > { %v233_v11 = vpop.xlane.xlu0 %232 }
  0xf1   : > { %v234_v12 = vrot.slane %v233_v11, 4 }
  0xf3   : > { %v235_v13 = vadd.f32 %v234_v12, %v233_v11 }
  0xf5   : > { %v236_v14 = vrot.slane %v235_v13, 2 }
  0xf7   : > { %v237_v15 = vadd.f32 %v236_v14, %v235_v13 }
  0xf9   : > { %v238_v16 = vrot.slane %v237_v15, 1 }
  0xfb   : > { %v239_v17 = vadd.f32 %v238_v16, %v237_v15 }
  0xfd   : > { %590 = vpush %v239_v17 }
 0x12e   : > { %s591_s24 = spop %590 }
 0x12f   : > { %s451_s3 = smul.f32 0.0005859375, %s591_s24 }
 0x132   : > { %v569_v43 = vpop.f32.mrb[0].mxu0 }
 0x133   : > { %v340_v44 = vpop.f32.mrb[1].mxu0 }
 0x134   : > { %574 = vmatprep.mubr.msk.f32.mxu1 %vm220_vm0, %v340_v44 }
 0x135   : > { %575 = vmatmul.mubr.msk.f32.vlgmr.msra.gmra.mrb[0].mxu1 %vm220_vm0, %v569_v43 }
 0x208   : > { %v576_v0 = vpop.f32.mrb[0].mxu1 }
 0x209   : > { %v433_v1 = vsub.f32 %v431_v62, %v576_v0  ;;  %v421_v2 = vpop.f32.mrb[1].mxu1 }
 0x20a   : > { %v432_v3 = vsub.f32 %v430_v63, %v421_v2 }
 0x20b   : > { %v435_v4 = vmul.f32 0.125, %v433_v1 }
 0x20c   : > { %v434_v5 = vmul.f32 0.125, %v432_v3 }
 0x20d   : > { %v437_v6 = vand.u32 2147483647, %v435_v4 }
 0x20e   : > { %v436_v7 = vand.u32 2147483647, %v434_v5 }
 0x20f   : > { %v439_v8 = vsel %vm220_vm0, %v437_v6, 0.0 }
 0x210   : > { %v438_v9 = vsel %vm220_vm0, %v436_v7, 0.0 }
 0x211   : > { %v440_v10 = vadd.f32 %v439_v8, %v438_v9 }
 0x213   : > { %441 = vadd.xlane.f32.xlu0 %v440_v10 }
 0x2a0   : > { %v442_v18 = vpop.xlane.xlu0 %441 }
 0x2a1   : > { %v443_v19 = vrot.slane %v442_v18, 4 }
 0x2a3   : > { %v444_v20 = vadd.f32 %v443_v19, %v442_v18 }
 0x2a5   : > { %v445_v21 = vrot.slane %v444_v20, 2 }
 0x2a7   : > { %v446_v22 = vadd.f32 %v445_v21, %v444_v20 }
 0x2a9   : > { %v447_v23 = vrot.slane %v446_v22, 1 }
 0x2ab   : > { %v448_v24 = vadd.f32 %v447_v23, %v446_v22 }
 0x2ad   : > { %592 = vpush %v448_v24 }
 0x2de   : > { %s593_s4 = spop %592 }
 0x2df   : > { %s452_s6 = smul.f32 0.0001953125, %s593_s4 }
 0x2e1   : > { %s453_s26 = sadd.f32 %s452_s6, %s451_s3 }
 0x2e3   : > { %s454_s29 = sadd.f32 %s453_s26, %s450_s25 }
 0x2e5   : > { %456 = sst [smem:[#allocation7]] %s454_s29 }
 0x2e6   : > { %724 = shalt.err (!%p721_p5)
}
 0x2e7   : > { %s776_s12 = smov [#allocation7]  }
 0x2e8   : > { %601 = dma.smem_to_hbm (%p613_p11), %s776_s12, 16, %s996_s2, [#allocation4]  }
 0x2e9   : > { %750 = dma.done.wait (%p613_p11), [#allocation4], 16  }
 0x2ea   : > { %752 = vsyncadd (%p613_p11), [#allocation4], 4294967280 }
 0x2eb   : > { %470 = sfence }
 0x2ec PF: > { %p16_p9 = scmp.ge.s32.totalorder %s812_s14, 4   ;;  %s1006_s9 = smov %s759_s10 }
 0x2ed   : > { %s1007_s10 = smov %s763_s11  ;;  %s1008_s11 = smov %s822_s17 }
 0x2ee   : > { %s1009_s12 = smov %s812_s14  ;;  %18 = sbr.rel (!%p16_p9) target bundleno = 6 (0x6), region = 84 }
 0x2f5   :  { %476 = vsyncpa [#allocation3], 1 }
 0x2f6   :  { %478 = vsyncpa [#allocation3 + $0x1], 1 }
 0x2f7   :  { %479 = vsyncpa [#allocation6], 1 }
 0x2f8   :  { %481 = vsyncpa [#allocation6 + $0x1], 1 }
 0x2f9   :  { %482 = vsyncpa [#allocation4], 1 }
 0x2fa   :  { %484 = vsyncpa [#allocation4 + $0x1], 1 }

</bundles_post_ra>
